<compile_context>
chip_gen: v6e
topology: v6e:2x2x1
jax: 0.10.0
libtpu: 0.0.40
codegen_flags: <defaults>
</compile_context>

<pallas_src>
import jax
import jax.numpy as jnp
from jax.experimental import pallas as pl
from jax.experimental.pallas import tpu as pltpu


def _vmem_identity_kernel(x_ref, o_ref):
    # Whole-tile VMEM copy (identity forward pass).
    o_ref[...] = x_ref[...]


def _hbm_dma_identity_kernel(x_hbm, o_hbm, sem):
    # Single HBM->HBM DMA of the whole array; TensorCore does no vld/vst work.
    cp = pltpu.make_async_copy(x_hbm, o_hbm, sem)
    cp.start()
    cp.wait()


# Below this size a single un-pipelined whole-array block is cheapest; above it
# the HBM->HBM DMA path avoids all VMEM staging and pipelining concerns.
_SMALL_BYTES = 512 * 1024


def _lane_dense_2d_shape(total_elems, fallback_cols):
    """Pick (rows, cols) with cols a large multiple of 128 and rows % 8 == 0
    when possible, so the copy uses fully dense vregs and unmasked stores."""
    for c in (2048, 1024, 512, 256, 128):
        if total_elems % c == 0 and (total_elems // c) % 8 == 0:
            return total_elems // c, c
    for c in (2048, 1024, 512, 256, 128):
        if total_elems % c == 0:
            return total_elems // c, c
    return total_elems // fallback_cols, fallback_cols


def linear_block_forward(x):
    """Identity forward of LinearBlock."""
    if x.size == 0:
        return x  # nothing to copy

    itemsize = jnp.dtype(x.dtype).itemsize
    total_bytes = x.size * itemsize

    if total_bytes <= _SMALL_BYTES:
        fallback_cols = x.shape[-1] if x.ndim >= 1 and x.shape[-1] > 0 else 1
        rows, cols = _lane_dense_2d_shape(x.size, fallback_cols)
        x2 = x.reshape(rows, cols)  # metadata-only bitcast of a contiguous array
        out = pl.pallas_call(
            _vmem_identity_kernel,
            out_shape=jax.ShapeDtypeStruct((rows, cols), x2.dtype),
            in_specs=[pl.BlockSpec((rows, cols), lambda: (0, 0))],
            out_specs=pl.BlockSpec((rows, cols), lambda: (0, 0)),
            input_output_aliases={0: 0},
        )(x2)
        return out.reshape(x.shape)

    # Large input: one HBM->HBM DMA, no VMEM buffers at all.
    return pl.pallas_call(
        _hbm_dma_identity_kernel,
        out_shape=jax.ShapeDtypeStruct(x.shape, x.dtype),
        in_specs=[pl.BlockSpec(memory_space=pl.ANY)],
        out_specs=pl.BlockSpec(memory_space=pl.ANY),
        scratch_shapes=[pltpu.SemaphoreType.DMA],
    )(x)


if __name__ == "__main__":
    key = jax.random.PRNGKey(0)

    # Primary small input consistent with typical usage of the test module
    # (exercises the lane-dense single-block VMEM path).
    x = jax.random.normal(key, (2, 4, 16, 16), dtype=jnp.float32)
    y = jax.block_until_ready(linear_block_forward(x))
    assert y.shape == x.shape and y.dtype == x.dtype
    assert bool(jnp.all(y == x))

    # Secondary check exercising the HBM->HBM DMA path (8 MiB).
    x_big = jax.random.normal(key, (2048, 1024), dtype=jnp.float32)
    y_big = jax.block_until_ready(linear_block_forward(x_big))
    assert y_big.shape == x_big.shape and y_big.dtype == x_big.dtype
    assert bool(jnp.all(y_big == x_big))

    print("KERNEL_OK")
</pallas_src>

<mosaic_0001>
module attributes {stable_mosaic.version = 11 : i64} {
  func.func @_vmem_identity_kernel(%arg0: memref<8x256xf32, #tpu.memory_space<vmem>>, %arg1: memref<8x256xf32, #tpu.memory_space<vmem>>) attributes {dimension_semantics = [], scalar_prefetch = 0 : i64, scratch_operands = 0 : i64, tpu.core_type = #tpu.core_type<tc>} {
    %c0 = arith.constant 0 : index
    %c0_0 = arith.constant 0 : index
    %0 = vector.load %arg0[%c0, %c0_0] : memref<8x256xf32, #tpu.memory_space<vmem>>, vector<8x256xf32>
    %c0_1 = arith.constant 0 : index
    %c0_2 = arith.constant 0 : index
    %1 = vector.load %arg1[%c0_1, %c0_2] : memref<8x256xf32, #tpu.memory_space<vmem>>, vector<8x256xf32>
    tpu.vector_store %arg1[%c0_1, %c0_2], %0 {strides = array<i32>} : memref<8x256xf32, #tpu.memory_space<vmem>>, vector<8x256xf32>,
    return
  }
}

</mosaic_0001>

<bundles_post_ra>
// kernel: tpu_custom_call.1
= control target key start
LH: loop header
LB: loop body
LE: loop exit
PB: predicated region body
PF: predicated region fallthrough
CT: control target
= control target key end

     0   :  { %6 = vsyncpa [#allocation3], 0  ;;  %s104_s0 = inlined_call_operand.hbm [shape: f32[8,256], index: 0, kind: input, shape index: {}, may-alias: {0,1}]   ;;  %s105_s1 = inlined_call_operand.hbm [shape: f32[8,256], index: 1, kind: output, shape index: {}, may-alias: {0,1}]  }
   0x1   :  { %7 = vsyncpa [#allocation4], 0  ;;  %s86_s6 = smov [#allocation2]  }
   0x2   :  { %s14_s7 = sshll.u32 %s86_s6, 4  ;;  %s15_s7 = int_to_ptr.vmem [resolvable:$true] %s14_s7 }
   0x3   :  { %s50_s8 = scalar_lea.vmem %s15_s7, 256  ;;  %p55_p1 = scmp.lt.s32.totalorder %s15_s7, %s15_s7 }
   0x4   :  { %p51_p0 = scmp.ne.s32.totalorder %s15_s7, %s50_s8  ;;  %p56_p2 = scmp.lt.s32.totalorder %s50_s8, %s50_s8 }
   0x6   :  { %p57_p3 = por %p56_p2, %p55_p1 }
   0x8   :  { %p58_p4 = pnand %p57_p3, %p51_p0 }
   0xa   :  { %61 = shalt.err (!%p58_p4)
}
   0xb   :  { %17 = dma.hbm_to_vmem [thread:$0]  %s104_s0, 256, %s15_s7, [#allocation3]  }
   0xc   :  { %82 = dma.done.wait [#allocation3], 256  }
   0xd   :  { %83 = vsyncadd [#allocation3], 4294967040  ;;  %s87_s11 = smov [#allocation5]   ;;  %v21_v0 = vld [vmem:[#allocation2] sm:$0xff]  ;;  %v22_v1 = vld [vmem:[#allocation2 + $0x8] sm:$0xff] }
   0xe   :  { %s31_s12 = sshll.u32 %s87_s11, 4  ;;  %23 = vst [vmem:[#allocation5] sm:$0xff] %v21_v0  ;;  %24 = vst [vmem:[#allocation5 + $0x8] sm:$0xff] %v22_v1  ;;  %s32_s12 = int_to_ptr.vmem [resolvable:$true] %s31_s12 }
   0xf   :  { %s62_s13 = scalar_lea.vmem %s32_s12, 256  ;;  %p67_p6 = scmp.lt.s32.totalorder %s32_s12, %s32_s12 }
  0x10   :  { %p63_p5 = scmp.ne.s32.totalorder %s32_s12, %s62_s13  ;;  %p68_p7 = scmp.lt.s32.totalorder %s62_s13, %s62_s13 }
  0x12   :  { %p69_p8 = por %p68_p7, %p67_p6 }
  0x14   :  { %p70_p9 = pnand %p69_p8, %p63_p5 }
  0x16   :  { %73 = shalt.err (!%p70_p9)
}
  0x17   :  { %34 = dma.vmem_to_hbm [thread:$0]  %s32_s12, 256, %s105_s1, [#allocation4]  }
  0x18   :  { %84 = dma.done.wait [#allocation4], 256  }
  0x19   :  { %85 = vsyncadd [#allocation4], 4294967040 }
  0x1a   :  { %38 = vsyncpa [#allocation3], 1 }
  0x1b   :  { %39 = vsyncpa [#allocation4], 1 }

</bundles_post_ra>
